<compile_context>
chip_gen: v6e
topology: v6e:2x2x1
jax: 0.10.0
libtpu: 0.0.40
codegen_flags: <defaults>
</compile_context>

<pallas_src>
import functools
import math

import jax
import jax.numpy as jnp
from jax.experimental import pallas as pl
from jax.experimental.pallas import tpu as pltpu


# ----------------------------------------------------------------------------
# pe buffer construction (one-time, mirrors the torch registered buffer)
# ----------------------------------------------------------------------------
def make_pe_buffer(d_model: int, max_len: int = 5000) -> jnp.ndarray:
    """pe of shape (max_len, 1, d_model) float32, matching the PyTorch buffer."""
    position = jnp.arange(0, max_len, dtype=jnp.float32)[:, None]            # (L, 1)
    div_term = jnp.exp(
        jnp.arange(0, d_model, 2, dtype=jnp.float32) * (-math.log(10000.0) / d_model)
    )                                                                         # (d/2,)
    angles = position * div_term                                              # (L, d/2)
    pe = jnp.zeros((max_len, d_model), dtype=jnp.float32)
    pe = pe.at[:, 0::2].set(jnp.sin(angles))
    pe = pe.at[:, 1::2].set(jnp.cos(angles))
    return pe[:, None, :]                                                     # (L, 1, d)


# ----------------------------------------------------------------------------
# Pallas kernels
# ----------------------------------------------------------------------------
def _pe_add_kernel(x_ref, pe_ref, o_ref):
    # x_ref: (tS, B, D) x.dtype   pe_ref: (tS, 1, D) f32   o_ref: (tS, B, D)
    # Accumulate in f32 (pe stays f32 like the torch buffer); cast at the store.
    y = x_ref[...].astype(jnp.float32) + pe_ref[...]        # sublane broadcast 1->B
    o_ref[...] = y.astype(o_ref.dtype)


def _pe_add_dropout_kernel(seed_ref, x_ref, pe_ref, o_ref, *,
                           p: float, tile_rows: int, use_hw_prng: bool):
    # Training path: fused add + inverted dropout with keep-prob (1 - p).
    # Matches torch dropout semantics (per-element Bernoulli + 1/(1-p) scale),
    # not its exact RNG stream.
    y = x_ref[...].astype(jnp.float32) + pe_ref[...]         # (tS, B, D) f32
    tS, B, D = y.shape

    thr = jnp.int32(int(round(p * (1 << 24))))               # drop if rnd24 < thr

    if use_hw_prng:
        # Hardware PRNG: ~1 draw per vreg, keeps the kernel HBM-bound on v7x.
        # Per-tile distinct stream via the grid index.
        pltpu.prng_seed(seed_ref[0], pl.program_id(0))
        raw = pltpu.prng_random_bits(y.shape)
        bits = raw if raw.dtype == jnp.uint32 else pltpu.bitcast(raw, jnp.uint32)
    else:
        # Counter-hash fallback (interpret / non-TPU backends only).
        # NOTE: uint32 global counter wraps past 2^32 elements -- fallback only.
        row = jax.lax.broadcasted_iota(jnp.int32, y.shape, 0).astype(jnp.uint32)
        col = jax.lax.broadcasted_iota(jnp.int32, y.shape, 1).astype(jnp.uint32)
        dep = jax.lax.broadcasted_iota(jnp.int32, y.shape, 2).astype(jnp.uint32)
        base = pl.program_id(0).astype(jnp.uint32) * jnp.uint32(tile_rows) + row
        gi = (base * jnp.uint32(B) + col) * jnp.uint32(D) + dep
        seed = seed_ref[0].astype(jnp.uint32)
        h = gi * jnp.uint32(0x9E3779B9) + seed * jnp.uint32(0x85EBCA6B)
        h ^= h >> 16
        h *= jnp.uint32(0x85EBCA6B)
        h ^= h >> 13
        h *= jnp.uint32(0xC2B2AE35)
        h ^= h >> 16
        bits = h

    keep = (bits >> jnp.uint32(8)).astype(jnp.int32) >= thr   # P(keep) = 1 - p
    scale = jnp.float32(1.0 / (1.0 - p))                      # f32 scale (no bf16 bias)
    o_ref[...] = jnp.where(keep, y * scale, 0.0).astype(o_ref.dtype)


# ----------------------------------------------------------------------------
# Wrapper
# ----------------------------------------------------------------------------
def _round_up(x: int, m: int) -> int:
    return (x + m - 1) // m * m


def positional_encoding(
    x: jnp.ndarray,
    pe_buffer: jnp.ndarray,          # (max_len, 1, d_model) float32
    *,
    dropout_p: float = 0.1,
    training: bool = False,
    seed: int = 0,
    donate_x: bool = False,          # alias x's HBM buffer to the output
) -> jnp.ndarray:
    """x: (seq_len, batch, d_model); returns same shape/dtype."""
    S, B, D = x.shape
    assert pe_buffer.ndim == 3 and pe_buffer.shape[1] == 1 and pe_buffer.shape[2] == D
    assert pe_buffer.shape[0] >= S, "seq_len exceeds max_len of the PE buffer"

    itemsize = jnp.dtype(x.dtype).itemsize
    sublane = max(8, 32 // itemsize)                 # 8 for f32, 16 for bf16, 32 for int8

    on_tpu = jax.default_backend() == "tpu"
    vmem_cap = 64 << 20                              # conservative default (v7x)
    if on_tpu:
        try:
            vmem_cap = int(pltpu.get_tpu_info().vmem_capacity_bytes)
        except Exception:
            pass

    # ---- seq-axis tile size, derived from *padded* VMEM bytes ----
    # target ~8 MiB padded x-block on 128 MiB-VMEM chips (v5e/v6e), ~4 MiB on v7x.
    target_block_bytes = (8 << 20) if vmem_cap >= (96 << 20) else (4 << 20)
    padded_row_x = _round_up(B, sublane) * _round_up(D, 128) * itemsize   # per seq row
    padded_row_pe = 8 * _round_up(D, 128) * 4                             # pe is f32, B dim = 1 -> 8
    tS = max(1, target_block_bytes // padded_row_x)
    if tS >= 8:
        tS = (tS // 8) * 8
    tS = min(tS, S)
    grid = (pl.cdiv(S, tS),)

    # Minor two dims of every block equal the full array dims ((B, D) / (1, D)),
    # so the (8,128) divisibility rule is satisfied for any tS.
    x_spec = pl.BlockSpec((tS, B, D), lambda i: (i, 0, 0))
    pe_spec = pl.BlockSpec((tS, 1, D), lambda i: (i, 0, 0))
    o_spec = pl.BlockSpec((tS, B, D), lambda i: (i, 0, 0))
    out_shape = jax.ShapeDtypeStruct((S, B, D), x.dtype)

    compiler_params = None
    if on_tpu:
        # Double-buffered: 2*(x_in + out + pe) padded blocks + slack; never ask
        # for more than 75% of physical VMEM (v7x has only 64 MiB per TC).
        x_blk = tS * padded_row_x
        pe_blk = tS * padded_row_pe
        need = 2 * (2 * x_blk + pe_blk) + (4 << 20)
        vmem_limit = int(min(max(16 << 20, need), int(vmem_cap * 0.75)))
        # TODO(synk): on v7x, profile whether "parallel" shards the seq grid
        # across both TensorCores; if not, switch to pltpu.CORE_PARALLEL.
        compiler_params = pltpu.CompilerParams(
            dimension_semantics=("parallel",),
            vmem_limit_bytes=vmem_limit,
        )

    if (not training) or dropout_p == 0.0:
        # Eval mode: dropout is identity (nn.Dropout in .eval()).
        return pl.pallas_call(
            _pe_add_kernel,
            out_shape=out_shape,
            grid=grid,
            in_specs=[x_spec, pe_spec],
            out_specs=o_spec,
            compiler_params=compiler_params,
            input_output_aliases=({0: 0} if donate_x else {}),
        )(x, pe_buffer)

    # Training mode: fused add + inverted dropout.
    seed_arr = jnp.array([seed], dtype=jnp.int32)
    kernel = functools.partial(
        _pe_add_dropout_kernel,
        p=float(dropout_p),
        tile_rows=tS,
        use_hw_prng=on_tpu,          # HW PRNG on real TPUs; counter-hash fallback otherwise
    )
    return pl.pallas_call(
        kernel,
        out_shape=out_shape,
        grid=grid,
        in_specs=[
            pl.BlockSpec(memory_space=pltpu.MemorySpace.SMEM),   # seed scalar
            x_spec,
            pe_spec,
        ],
        out_specs=o_spec,
        compiler_params=compiler_params,
        input_output_aliases=({1: 0} if donate_x else {}),
    )(seed_arr, x, pe_buffer)


# ----------------------------------------------------------------------------
# Demo / self-test
# ----------------------------------------------------------------------------
if __name__ == "__main__":
    seq_len, batch, d_model = 8, 2, 32

    key = jax.random.PRNGKey(0)
    x = jax.random.normal(key, (seq_len, batch, d_model), dtype=jnp.float32)

    pe_buffer = make_pe_buffer(d_model, max_len=5000)    # (5000, 1, 32) f32

    # Eval-mode forward (dropout is identity): exact check vs plain JAX.
    out = positional_encoding(x, pe_buffer, dropout_p=0.1, training=False)
    out = jax.block_until_ready(out)

    ref = x + pe_buffer[:seq_len]                        # (8,1,32) broadcasts over batch
    assert out.shape == x.shape and out.dtype == x.dtype
    assert jnp.allclose(out, ref, atol=1e-6, rtol=1e-6)

    # Training-mode (fused dropout) path: every element must be either 0
    # (dropped) or (x + pe) / (1 - p) (kept & rescaled).
    p = 0.1
    out_train = positional_encoding(x, pe_buffer, dropout_p=p, training=True, seed=0)
    out_train = jax.block_until_ready(out_train)
    scaled = ref / (1.0 - p)
    ok = jnp.all((out_train == 0) | jnp.isclose(out_train, scaled, atol=1e-5, rtol=1e-5))
    assert bool(ok)

    print("KERNEL_OK")
</pallas_src>

<mosaic_0001>
module attributes {stable_mosaic.version = 11 : i64} {
  func.func @_pe_add_kernel(%arg0: i32, %arg1: memref<8x2x32xf32, #tpu.memory_space<vmem>>, %arg2: memref<8x1x32xf32, #tpu.memory_space<vmem>>, %arg3: memref<8x2x32xf32, #tpu.memory_space<vmem>>) attributes {dimension_semantics = [#tpu.dimension_semantics<arbitrary>], iteration_bounds = array<i64: 1>, scalar_prefetch = 0 : i64, scratch_operands = 0 : i64, tpu.core_type = #tpu.core_type<tc>, window_params = [{transform_indices = @transform_0, window_bounds = array<i64: 8, 2, 32>}, {transform_indices = @transform_1, window_bounds = array<i64: 8, 1, 32>}, {transform_indices = @transform_2, window_bounds = array<i64: 8, 2, 32>}]} {
    %c0 = arith.constant 0 : index
    %c0_0 = arith.constant 0 : index
    %c0_1 = arith.constant 0 : index
    %0 = vector.load %arg1[%c0, %c0_0, %c0_1] : memref<8x2x32xf32, #tpu.memory_space<vmem>>, vector<8x2x32xf32>
    %c0_2 = arith.constant 0 : index
    %c0_3 = arith.constant 0 : index
    %c0_4 = arith.constant 0 : index
    %1 = vector.load %arg2[%c0_2, %c0_3, %c0_4] : memref<8x1x32xf32, #tpu.memory_space<vmem>>, vector<8x1x32xf32>
    %2 = vector.broadcast %1 : vector<8x1x32xf32> to vector<8x2x32xf32>
    %3 = arith.addf %0, %2 : vector<8x2x32xf32>
    %c0_5 = arith.constant 0 : index
    %c0_6 = arith.constant 0 : index
    %c0_7 = arith.constant 0 : index
    %4 = vector.load %arg3[%c0_5, %c0_6, %c0_7] : memref<8x2x32xf32, #tpu.memory_space<vmem>>, vector<8x2x32xf32>
    tpu.vector_store %arg3[%c0_5, %c0_6, %c0_7], %3 {strides = array<i32>} : memref<8x2x32xf32, #tpu.memory_space<vmem>>, vector<8x2x32xf32>,
    return
  }
  func.func @transform_0(%arg0: i32) -> (i32, i32, i32) {
    %c0_i32 = arith.constant 0 : i32
    %c0_i32_0 = arith.constant 0 : i32
    %c0_i32_1 = arith.constant 0 : i32
    return %arg0, %c0_i32, %c0_i32_0 : i32, i32, i32
  }
  func.func @transform_1(%arg0: i32) -> (i32, i32, i32) {
    %c0_i32 = arith.constant 0 : i32
    %c0_i32_0 = arith.constant 0 : i32
    %c0_i32_1 = arith.constant 0 : i32
    return %arg0, %c0_i32, %c0_i32_0 : i32, i32, i32
  }
  func.func @transform_2(%arg0: i32) -> (i32, i32, i32) {
    %c0_i32 = arith.constant 0 : i32
    %c0_i32_0 = arith.constant 0 : i32
    %c0_i32_1 = arith.constant 0 : i32
    return %arg0, %c0_i32, %c0_i32_0 : i32, i32, i32
  }
}

</mosaic_0001>

<bundles_post_ra>
// kernel: tpu_custom_call.1
= control target key start
LH: loop header
LB: loop body
LE: loop exit
PB: predicated region body
PF: predicated region fallthrough
CT: control target
= control target key end

     0   :  { %vm84_vm0 = vcmask 254976   ;;  %s219_s0 = inlined_call_operand.vmem [shape: f32[8,2,32], index: 0, kind: input, shape index: {}]   ;;  %s220_s1 = inlined_call_operand.vmem [shape: f32[5000,1,32], index: 1, kind: input, shape index: {}]   ;;  %s221_s2 = inlined_call_operand.hbm [shape: f32[8,2,32], index: 2, kind: output, shape index: {}]  }
   0x1   :  { %v12_v0 = vld [vmem:[%s219_s0] sm:$0x3]  ;;  %v13_v3 = vld [vmem:[%s219_s0 + $0x2] sm:$0x3]  ;;  %v14_v5 = vld [vmem:[%s219_s0 + $0x4] sm:$0x3] }
   0x2   :  { %v109_v1 = vld [vmem:[%s220_s1] ss:$0 sm:$0xff]  ;;  %v110_v4 = vld [vmem:[%s220_s1 + $0x1] ss:$0 sm:$0xff]  ;;  %v111_v7 = vld [vmem:[%s220_s1 + $0x2] ss:$0 sm:$0xff] }
   0x3   :  { %v76_v2 = vadd.f32 %v109_v1, %v12_v0  ;;  %v77_v6 = vadd.f32 %v110_v4, %v13_v3  ;;  %v15_v8 = vld [vmem:[%s219_s0 + $0x6] sm:$0x3]  ;;  %v112_v9 = vld [vmem:[%s220_s1 + $0x3] ss:$0 sm:$0xff]  ;;  %v78_v10 = vadd.f32 %v111_v7, %v14_v5  ;;  %v16_v12 = vld [vmem:[%s219_s0 + $0x8] sm:$0x3] }
   0x4   :  { %v79_v11 = vadd.f32 %v112_v9, %v15_v8  ;;  %v113_v13 = vld [vmem:[%s220_s1 + $0x4] ss:$0 sm:$0xff]  ;;  %v17_v14 = vld [vmem:[%s219_s0 + $0xa] sm:$0x3]  ;;  %v114_v16 = vld [vmem:[%s220_s1 + $0x5] ss:$0 sm:$0xff] }
   0x5   :  { %85 = vst.msk [vmem:[#allocation2] sm:$0x3] %vm84_vm0, %v76_v2  ;;  %86 = vst.msk [vmem:[#allocation2 + $0x2] sm:$0x3] %vm84_vm0, %v77_v6  ;;  %v80_v15 = vadd.f32 %v113_v13, %v16_v12  ;;  %v18_v17 = vld [vmem:[%s219_s0 + $0xc] sm:$0x3]  ;;  %v81_v19 = vadd.f32 %v114_v16, %v17_v14 }
   0x6   :  { %v115_v18 = vld [vmem:[%s220_s1 + $0x6] ss:$0 sm:$0xff]  ;;  %87 = vst.msk [vmem:[#allocation2 + $0x4] sm:$0x3] %vm84_vm0, %v78_v10  ;;  %88 = vst.msk [vmem:[#allocation2 + $0x6] sm:$0x3] %vm84_vm0, %v79_v11 }
   0x7   :  { %v82_v20 = vadd.f32 %v115_v18, %v18_v17  ;;  %v19_v21 = vld [vmem:[%s219_s0 + $0xe] sm:$0x3]  ;;  %v116_v22 = vld [vmem:[%s220_s1 + $0x7] ss:$0 sm:$0xff] }
   0x8   :  { %7 = vsyncpa [#allocation3], 0  ;;  %89 = vst.msk [vmem:[#allocation2 + $0x8] sm:$0x3] %vm84_vm0, %v80_v15  ;;  %v83_v23 = vadd.f32 %v116_v22, %v19_v21  ;;  %s142_s13 = smov [#allocation2]  }
   0x9   :  { %s98_s14 = sshll.u32 %s142_s13, 4  ;;  %90 = vst.msk [vmem:[#allocation2 + $0xa] sm:$0x3] %vm84_vm0, %v81_v19  ;;  %91 = vst.msk [vmem:[#allocation2 + $0xc] sm:$0x3] %vm84_vm0, %v82_v20  ;;  %s99_s14 = int_to_ptr.vmem [resolvable:$true] %s98_s14 }
   0xa   :  { %92 = vst.msk [vmem:[#allocation2 + $0xe] sm:$0x3] %vm84_vm0, %v83_v23  ;;  %s120_s15 = scalar_lea.vmem %s99_s14, 256  ;;  %p125_p1 = scmp.lt.s32.totalorder %s99_s14, %s99_s14 }
   0xb   :  { %p121_p0 = scmp.ne.s32.totalorder %s99_s14, %s120_s15  ;;  %p126_p2 = scmp.lt.s32.totalorder %s120_s15, %s120_s15 }
   0xd   :  { %p127_p3 = por %p126_p2, %p125_p1 }
   0xf   :  { %p128_p4 = pnand %p127_p3, %p121_p0 }
  0x11   :  { %131 = shalt.err (!%p128_p4)
}
  0x12   :  { %s143_s0 = smov 32   ;;  %s144_s1 = smov 2  }
  0x13   :  { %104 = dma.vmem_to_hbm [thread:$0]  %s99_s14, 256, %s221_s2, [#allocation3], %s143_s0, %s143_s0, %s144_s1  }
  0x14   :  { %140 = dma.done.wait [#allocation3], 256  }
  0x15   :  { %141 = vsyncadd [#allocation3], 4294967040 }
  0x16   :  { %108 = vsyncpa [#allocation3], 1 }

</bundles_post_ra>
